<compile_context>
chip_gen: v6e
topology: v6e:2x2x1
jax: 0.10.0
libtpu: 0.0.40
codegen_flags: <defaults>
</compile_context>

<pallas_src>
import math

import numpy as np

import jax
import jax.numpy as jnp
from jax.experimental import pallas as pl
from jax.experimental.pallas import tpu as pltpu


def _dct_matrix_np(n: int) -> np.ndarray:
    """Orthonormal DCT-II matrix D: D[k, x] = s_k * cos(pi*(2x+1)*k/(2n))."""
    k = np.arange(n, dtype=np.float64)[:, None]
    x = np.arange(n, dtype=np.float64)[None, :]
    d = np.cos(np.pi * (2.0 * x + 1.0) * k / (2.0 * n))
    scale = np.where(k == 0, 1.0 / math.sqrt(n), math.sqrt(2.0 / n))
    return d * scale


def _idct_basis_t_np(block_size: int) -> np.ndarray:
    """M^T[(i,j),(u,v)] = D[u,i]*D[v,j]  so  pixels_flat = M^T @ coeffs_flat."""
    d = _dct_matrix_np(block_size)
    b2 = block_size * block_size
    return np.einsum("ui,vj->ijuv", d, d).reshape(b2, b2)


def _idct_kernel(mt_ref, x_ref, o_ref):
    # mt_ref: (b*b, b*b) inverse-DCT basis kron(D^T, D^T), resident in VMEM
    # x_ref : (b*b, TN)  coefficient tile  (freq on sublanes, N on lanes)
    # o_ref : (b*b, TN)  reconstructed pixel tile
    o_ref[...] = jnp.dot(
        mt_ref[...], x_ref[...], preferred_element_type=jnp.float32
    ).astype(o_ref.dtype)


def idct_forward(x, size, block_size: int, zigzag: bool = False,
                 max_tile_n: int = 8192):
    """IDCT.forward(x, size): x (B, b*b, C, h', w') -> (B, C, H, W)."""
    if zigzag:
        # TODO(synk): zigzag=True coefficient reordering not implemented (module
        # default is zigzag=False); it would fold into the basis as a column
        # permutation.
        raise NotImplementedError("zigzag=True not implemented")

    B, b2, C, hp, wp = x.shape
    b = block_size
    assert b2 == b * b, (b2, b)
    H, W = size
    assert hp * b == H and wp * b == W, "spatial size must be block-aligned"

    # Compile-time host-constant basis, in the input dtype so narrow inputs
    # stay narrow on the MXU (f32 accumulation via preferred_element_type).
    mt = jnp.asarray(_idct_basis_t_np(b), dtype=x.dtype)

    # Free reshape (no data movement): contract directly over the freq axis.
    N = C * hp * wp
    x_flat = x.reshape(B, b2, N)

    # N tile: full extent if it fits, else a multiple of 128 (lane-dense,
    # unmasked stores; partial last tile handled by Pallas padding).
    max_tn = max(128, (max_tile_n // 128) * 128)
    if B == 1 and N > 256:
        # Ensure >= 2 grid steps so both v7x TensorCores get work.
        max_tn = min(max_tn, pl.cdiv(pl.cdiv(N, 2), 128) * 128)
    TN = N if N <= max_tn else max_tn
    grid = (B, pl.cdiv(N, TN))

    flops = 2 * B * N * b2 * b2
    bytes_accessed = (x_flat.size * x_flat.dtype.itemsize
                      + mt.size * mt.dtype.itemsize
                      + B * b2 * N * x.dtype.itemsize)

    pix = pl.pallas_call(
        _idct_kernel,
        out_shape=jax.ShapeDtypeStruct((B, b2, N), x.dtype),
        grid=grid,
        in_specs=[
            # Basis: constant block index -> kept resident, not re-DMA'd.
            pl.BlockSpec((b2, b2), lambda bi, ni: (0, 0)),
            # Coefficients: batch dim squeezed, (b*b, TN) tile per grid step.
            pl.BlockSpec((None, b2, TN), lambda bi, ni: (bi, 0, ni)),
        ],
        out_specs=pl.BlockSpec((None, b2, TN), lambda bi, ni: (bi, 0, ni)),
        compiler_params=pltpu.CompilerParams(
            dimension_semantics=("parallel", "parallel"),
            vmem_limit_bytes=32 * 1024 * 1024,
        ),
        cost_estimate=pl.CostEstimate(
            flops=flops, transcendentals=0, bytes_accessed=bytes_accessed),
    )(mt, x_flat)

    # Deblockify (plain XLA layout plumbing, single fused copy):
    # (B, b*b, C, hp, wp) -> (B, C, H, W).
    out = pix.reshape(B, b, b, C, hp, wp)
    out = jnp.transpose(out, (0, 3, 4, 1, 5, 2)).reshape(B, C, H, W)
    return out


def idct_reference(x, size, block_size: int):
    """Plain-JAX reference of IDCT.forward (post with Identity), f32 output."""
    B, b2, C, hp, wp = x.shape
    b = block_size
    H, W = size
    d = jnp.asarray(_dct_matrix_np(b), dtype=jnp.float32)
    y = jnp.transpose(x, (0, 2, 3, 4, 1)).reshape(B, C, hp * wp, b, b)
    blocks = jnp.einsum("ui,bcluv,vj->bclij", d, y.astype(jnp.float32), d,
                        precision=jax.lax.Precision.HIGHEST)
    out = blocks.reshape(B, C, hp, wp, b, b)
    out = jnp.transpose(out, (0, 1, 2, 4, 3, 5)).reshape(B, C, H, W)
    return out


if __name__ == "__main__":
    key = jax.random.PRNGKey(0)
    k1, k2, _ = jax.random.split(key, 3)

    # Case 1: small shape, full-N tile, f32.
    b = 8
    B, C, H, W = 2, 4, 16, 16
    hp, wp = H // b, W // b
    x1 = jax.random.normal(k1, (B, b * b, C, hp, wp), dtype=jnp.float32)
    out1 = jax.block_until_ready(idct_forward(x1, (H, W), block_size=b))
    ref1 = idct_reference(x1, (H, W), block_size=b)
    assert out1.shape == (B, C, H, W), out1.shape
    assert jnp.allclose(out1.astype(jnp.float32), ref1, atol=2e-2, rtol=2e-2), \
        float(jnp.max(jnp.abs(out1.astype(jnp.float32) - ref1)))

    # Case 2: N = 320 with forced TN = 128 -> exercises a partial last N tile
    # (and N not a multiple of the tile / of 8*tile).
    B2, C2, H2, W2 = 1, 5, 64, 64
    hp2, wp2 = H2 // b, W2 // b
    x2 = jax.random.normal(k2, (B2, b * b, C2, hp2, wp2), dtype=jnp.float32)
    out2 = jax.block_until_ready(
        idct_forward(x2, (H2, W2), block_size=b, max_tile_n=128))
    ref2 = idct_reference(x2, (H2, W2), block_size=b)
    assert out2.shape == (B2, C2, H2, W2), out2.shape
    assert jnp.allclose(out2.astype(jnp.float32), ref2, atol=2e-2, rtol=2e-2), \
        float(jnp.max(jnp.abs(out2.astype(jnp.float32) - ref2)))

    # Case 3: bf16 input stays bf16 on the MXU (f32 accumulation); wider
    # tolerance vs the HIGHEST-precision f32 reference.
    x3 = x1.astype(jnp.bfloat16)
    out3 = jax.block_until_ready(idct_forward(x3, (H, W), block_size=b))
    ref3 = idct_reference(x3, (H, W), block_size=b)
    assert out3.dtype == jnp.bfloat16
    assert jnp.allclose(out3.astype(jnp.float32), ref3, atol=1e-1, rtol=1e-1), \
        float(jnp.max(jnp.abs(out3.astype(jnp.float32) - ref3)))

    print("KERNEL_OK")
</pallas_src>

<mosaic_0001>
module attributes {stable_mosaic.version = 11 : i64} {
  func.func @_idct_kernel(%arg0: i32, %arg1: i32, %arg2: memref<64x64xf32, #tpu.memory_space<vmem>>, %arg3: memref<1x64x16xf32, #tpu.memory_space<vmem>>, %arg4: memref<1x64x16xf32, #tpu.memory_space<vmem>>) attributes {dimension_semantics = [#tpu.dimension_semantics<parallel>, #tpu.dimension_semantics<parallel>], iteration_bounds = array<i64: 2, 1>, scalar_prefetch = 0 : i64, scratch_operands = 0 : i64, tpu.core_type = #tpu.core_type<tc>, window_params = [{pipeline_mode = #tpu.pipeline_mode<synchronous>, transform_indices = @transform_0, window_bounds = array<i64: 64, 64>}, {transform_indices = @transform_1, window_bounds = array<i64: 1, 64, 16>}, {transform_indices = @transform_2, window_bounds = array<i64: 1, 64, 16>}]} {
    %c0 = arith.constant 0 : index
    %c0_0 = arith.constant 0 : index
    %0 = vector.load %arg2[%c0, %c0_0] : memref<64x64xf32, #tpu.memory_space<vmem>>, vector<64x64xf32>
    %c0_1 = arith.constant 0 : index
    %c0_2 = arith.constant 0 : index
    %c0_3 = arith.constant 0 : index
    %1 = vector.load %arg3[%c0_1, %c0_2, %c0_3] : memref<1x64x16xf32, #tpu.memory_space<vmem>>, vector<1x64x16xf32>
    %2 = vector.shape_cast %1 : vector<1x64x16xf32> to vector<64x16xf32>
    %cst = arith.constant dense<0.000000e+00> : vector<64x16xf32>
    %3 = tpu.matmul %0, %2, %cst {dimension_numbers = #tpu.dot_dimension_numbers<[1], [0], [0], [1], [0, 0, 1, 1], [], []>} : vector<64x64xf32>, vector<64x16xf32>, vector<64x16xf32> -> vector<64x16xf32>
    %c0_4 = arith.constant 0 : index
    %c0_5 = arith.constant 0 : index
    %c0_6 = arith.constant 0 : index
    %4 = vector.load %arg4[%c0_4, %c0_5, %c0_6] : memref<1x64x16xf32, #tpu.memory_space<vmem>>, vector<1x64x16xf32>
    %5 = vector.shape_cast %4 : vector<1x64x16xf32> to vector<64x16xf32>
    %6 = vector.shape_cast %3 : vector<64x16xf32> to vector<1x64x16xf32>
    tpu.vector_store %arg4[%c0_4, %c0_5, %c0_6], %6 {strides = array<i32>} : memref<1x64x16xf32, #tpu.memory_space<vmem>>, vector<1x64x16xf32>,
    return
  }
  func.func @transform_0(%arg0: i32, %arg1: i32) -> (i32, i32) {
    %c0_i32 = arith.constant 0 : i32
    %c0_i32_0 = arith.constant 0 : i32
    %c0_i32_1 = arith.constant 0 : i32
    return %c0_i32, %c0_i32_0 : i32, i32
  }
  func.func @transform_1(%arg0: i32, %arg1: i32) -> (i32, i32, i32) {
    %c0_i32 = arith.constant 0 : i32
    %c0_i32_0 = arith.constant 0 : i32
    return %arg0, %c0_i32, %arg1 : i32, i32, i32
  }
  func.func @transform_2(%arg0: i32, %arg1: i32) -> (i32, i32, i32) {
    %c0_i32 = arith.constant 0 : i32
    %c0_i32_0 = arith.constant 0 : i32
    return %arg0, %c0_i32, %arg1 : i32, i32, i32
  }
}

</mosaic_0001>

<bundles_post_ra>
// kernel: tpu_custom_call.1
= control target key start
LH: loop header
LB: loop body
LE: loop exit
PB: predicated region body
PF: predicated region fallthrough
CT: control target
= control target key end

     0   :  { %s557_s9 = smov 0   ;;  %s559_s10 = smov 0   ;;  %s647_s0 = inlined_call_operand.vmem [shape: f32[64,64], index: 0, kind: input, shape index: {}]   ;;  %s648_s1 = inlined_call_operand.vmem [shape: f32[2,64,16], index: 1, kind: input, shape index: {}]   ;;  %s649_s2 = inlined_call_operand.vmem [shape: f32[2,64,16], index: 2, kind: output, shape index: {}]  }
   0x1   :  { %s561_s11 = smov 0  }
   0x2 LB: > { %s24_s12 = sadd.s32 1, %s536_s10  ;;  %p417_p0 = scmp.ge.s32.totalorder %s540_s11, 1  ;;  %s540_s11 = sphi %s561_s11, %s12_s11   ;;  %s536_s10 = sphi %s559_s10, %s651_s10   ;;  %s532_s9 = sphi %s557_s9, %s650_s9  }
   0x3   : > { %p26_p1 = scmp.ge.s32.totalorder %s24_s12, 2  ;;  %p131_p2 = scmp.lt.s32.totalorder %s540_s11, 3 }
   0x5   : > { %s653_s12 = smov (%p26_p1, %s24_s12), 0  ;;  %p132_p3 = pnand %p417_p0, %p131_p2 }
   0x6   : > { %p159_p4 = scmp.lt.s32.totalorder (!%p132_p3), %s532_s9, 1 }
   0x7   : > { %135 = sbr.rel (%p132_p3) target bundleno = 232 (0xe8), region = 28 }
   0xc   : > { %v175_v0 = vld [vmem:[%s647_s0] sm:$0xff]  ;;  %vm191_vm0 = vcmask 523264   ;;  %s655_s9 = smov (!%p159_p4, %s532_s9), 1  ;;  %v176_v10 = vld [vmem:[%s647_s0 + $0x8] sm:$0xff]  ;;  %v177_v12 = vld [vmem:[%s647_s0 + $0x10] sm:$0xff]  ;;  %vm321_vm1 = vcmask 130048  }
   0xd   : > { %v179_v1 = vld [vmem:[%s647_s0 + $0x20] sm:$0xff]  ;;  %466 = vmatprep.mubr.msk.f32.mxu0 %vm191_vm0, %v175_v0  ;;  %s432_s17 = sshll.u32 %s655_s9, 6  ;;  %v180_v11 = vld [vmem:[%s647_s0 + $0x28] sm:$0xff]  ;;  %v181_v13 = vld [vmem:[%s647_s0 + $0x30] sm:$0xff] }
   0xe   : > { %472 = vmatprep.mubr.msk.f32.mxu1 %vm191_vm0, %v179_v1  ;;  %s591_s20 = scalar_lea.vmem %s648_s1, %s432_s17  ;;  %v178_v14 = vld [vmem:[%s647_s0 + $0x18] sm:$0xff]  ;;  %s174_s7 = scalar_lea.vmem %s649_s2, %s432_s17 }
   0xf   : > { %v190_v2 = vld [vmem:[%s591_s20 + $0x38] sm:$0xff]  ;;  %v189_v3 = vld [vmem:[%s591_s20 + $0x30] sm:$0xff]  ;;  %v188_v4 = vld [vmem:[%s591_s20 + $0x28] sm:$0xff] }
  0x10   : > { %450 = vmatprep.subr.mxu0 %v190_v2  ;;  %478 = vmatprep.subr.mxu1 %v190_v2  ;;  %v187_v5 = vld [vmem:[%s591_s20 + $0x20] sm:$0xff]  ;;  %v186_v6 = vld [vmem:[%s591_s20 + $0x18] sm:$0xff]  ;;  %v185_v7 = vld [vmem:[%s591_s20 + $0x10] sm:$0xff] }
  0x11   : > { %451 = vmatpush3.msra.mxu0 %v190_v2  ;;  %486 = vmatpush3.msra.mxu1 %v190_v2  ;;  %v184_v8 = vld [vmem:[%s591_s20 + $0x8] sm:$0xff]  ;;  %v183_v9 = vld [vmem:[%s591_s20] sm:$0xff]  ;;  %v182_v15 = vld [vmem:[%s647_s0 + $0x38] sm:$0xff] }
  0x12   : > { %452 = vmatprep.subr.mxu0 %v189_v3  ;;  %479 = vmatprep.subr.mxu1 %v189_v3 }
  0x13   : > { %453 = vmatpush3.msra.mxu0 %v189_v3  ;;  %487 = vmatpush3.msra.mxu1 %v189_v3 }
  0x14   : > { %454 = vmatprep.subr.mxu0 %v188_v4  ;;  %480 = vmatprep.subr.mxu1 %v188_v4 }
  0x15   : > { %455 = vmatpush3.msra.mxu0 %v188_v4  ;;  %488 = vmatpush3.msra.mxu1 %v188_v4 }
  0x16   : > { %456 = vmatprep.subr.mxu0 %v187_v5  ;;  %481 = vmatprep.subr.mxu1 %v187_v5 }
  0x17   : > { %457 = vmatpush3.msra.mxu0 %v187_v5  ;;  %489 = vmatpush3.msra.mxu1 %v187_v5 }
  0x18   : > { %458 = vmatprep.subr.mxu0 %v186_v6  ;;  %482 = vmatprep.subr.mxu1 %v186_v6 }
  0x19   : > { %459 = vmatpush3.msra.mxu0 %v186_v6  ;;  %490 = vmatpush3.msra.mxu1 %v186_v6 }
  0x1a   : > { %460 = vmatprep.subr.mxu0 %v185_v7  ;;  %483 = vmatprep.subr.mxu1 %v185_v7 }
  0x1b   : > { %461 = vmatpush3.msra.mxu0 %v185_v7  ;;  %491 = vmatpush3.msra.mxu1 %v185_v7 }
  0x1c   : > { %462 = vmatprep.subr.mxu0 %v184_v8  ;;  %484 = vmatprep.subr.mxu1 %v184_v8 }
  0x1d   : > { %463 = vmatpush3.msra.mxu0 %v184_v8  ;;  %492 = vmatpush3.msra.mxu1 %v184_v8 }
  0x1e   : > { %464 = vmatprep.subr.mxu0 %v183_v9  ;;  %485 = vmatprep.subr.mxu1 %v183_v9 }
  0x1f   : > { %465 = vmatpush3.msra.mxu0 %v183_v9  ;;  %493 = vmatpush3.msra.mxu1 %v183_v9 }
  0x20   : > { %467 = vmatmul.mubr.msk.f32.vlgmr.msra.gmra.mxu0 %vm191_vm0, %v176_v10  ;;  %473 = vmatmul.mubr.msk.f32.vlgmr.msra.gmra.mxu1 %vm191_vm0, %v180_v11 }
  0x21   : > { %469 = vmatprep.mubr.msk.f32.mxu0 %vm191_vm0, %v177_v12  ;;  %475 = vmatprep.mubr.msk.f32.mxu1 %vm191_vm0, %v181_v13 }
  0x24   : > { %470 = vmatmul.mubr.msk.f32.gmra.mxu0 %vm191_vm0, %v178_v14  ;;  %476 = vmatmul.mubr.msk.f32.gmra.mxu1 %vm191_vm0, %v182_v15 }
  0xe0   : > { %v468_v16 = vpop.f32.mrf.mxu0  ;;  %v474_v17 = vpop.f32.mrf.mxu1 }
  0xe1   : > { %323 = vst.msk [vmem:[%s174_s7 + $0x8] sm:$0xff] %vm321_vm1, %v468_v16  ;;  %327 = vst.msk [vmem:[%s174_s7 + $0x28] sm:$0xff] %vm321_vm1, %v474_v17 }
  0xe2   : > { %v282_v18 = vpop.f32.mrf.mxu0  ;;  %v302_v19 = vpop.f32.mrf.mxu1 }
  0xe3   : > { %322 = vst.msk [vmem:[%s174_s7] sm:$0xff] %vm321_vm1, %v282_v18  ;;  %326 = vst.msk [vmem:[%s174_s7 + $0x20] sm:$0xff] %vm321_vm1, %v302_v19 }
  0xe4   : > { %v471_v20 = vpop.f32.mrf.mxu0  ;;  %v477_v21 = vpop.f32.mrf.mxu1 }
  0xe5   : > { %325 = vst.msk [vmem:[%s174_s7 + $0x18] sm:$0xff] %vm321_vm1, %v471_v20  ;;  %329 = vst.msk [vmem:[%s174_s7 + $0x38] sm:$0xff] %vm321_vm1, %v477_v21 }
  0xe6   : > { %v292_v22 = vpop.f32.mrf.mxu0  ;;  %v312_v23 = vpop.f32.mrf.mxu1 }
  0xe7   : > { %324 = vst.msk [vmem:[%s174_s7 + $0x10] sm:$0xff] %vm321_vm1, %v292_v22  ;;  %328 = vst.msk [vmem:[%s174_s7 + $0x30] sm:$0xff] %vm321_vm1, %v312_v23 }
  0xe8 PF: > { %s12_s11 = sadd.s32 1, %s540_s11   ;;  %s650_s9 = smov %s536_s10 }
  0xe9   : > { %p9_p5 = scmp.ge.s32.totalorder %s12_s11, 4   ;;  %s651_s10 = smov %s653_s12 }
  0xeb   :  { %11 = sbr.rel (!%p9_p5) target bundleno = 2 (0x2), region = 58 }

</bundles_post_ra>
